<compile_context>
chip_gen: v5e
topology: v5e:2x2
jax: 0.10.0
libtpu: 0.0.40
codegen_flags: <defaults>
</compile_context>

<pallas_src>
import functools

import jax
import jax.numpy as jnp
from jax.experimental import pallas as pl
from jax.experimental.pallas import tpu as pltpu


def _round_up(n, m):
    return ((n + m - 1) // m) * m


def _vmem_capacity_bytes():
    """Best-effort physical VMEM capacity of the local TPU (bytes)."""
    try:
        info = pltpu.get_tpu_info()
        cap = getattr(info, "vmem_capacity_bytes", None)
        if cap:
            return int(cap)
    except Exception:
        pass
    try:
        kind = jax.devices()[0].device_kind.lower()
    except Exception:
        kind = ""
    if "v7" in kind:
        return 64 * 1024 * 1024
    if any(s in kind for s in ("v5 lite", "v5e", "v5litepod", "v6", "trillium")):
        return 128 * 1024 * 1024
    # Unknown part: be conservative (v7x-sized VMEM).
    return 64 * 1024 * 1024


def pipeline_kernel(x_ref, w1_ref, b1_ref, w2_ref, b2_ref, o_ref, *,
                    tanh_in_bf16):
    # x arrives in its HBM dtype (f32 typically); cast to bf16 here so the
    # wrapper never materializes a padded bf16 copy of x in HBM.
    x = x_ref[...].astype(w1_ref.dtype)
    # Stage 1: Dense (D_in -> H). bf16 operands, f32 accumulation on the MXU.
    h = jnp.dot(x, w1_ref[...], preferred_element_type=jnp.float32)
    h = h + b1_ref[...]                       # (1, Hp) broadcasts over rows (f32)
    # Stage 2: Tanh activation (EUP slot). Optional bf16 EUP fast path
    # (v6e/v7x only) also removes the separate astype pass before the MXU.
    if tanh_in_bf16:
        h = jnp.tanh(h.astype(jnp.bfloat16))
    else:
        h = jnp.tanh(h).astype(w2_ref.dtype)
    # Stage 3: Dense (H -> D_out). bf16 MXU, f32 accumulation.
    y = jnp.dot(h, w2_ref[...], preferred_element_type=jnp.float32)
    o_ref[...] = (y + b2_ref[...]).astype(o_ref.dtype)


def prepare_pipeline_params(w1, b1, w2, b2):
    """One-time prep: 128-pad + bf16-cast the weights (hoisted out of forward).

    Returns (params_tuple, dims_tuple); pass both to torch_pipeline_forward.
    """
    D_in, H = w1.shape
    D_out = w2.shape[1]
    D_in_p = _round_up(D_in, 128)
    H_p = _round_up(H, 128)
    D_out_p = _round_up(D_out, 128)

    w1p = jnp.pad(w1, ((0, D_in_p - D_in), (0, H_p - H))).astype(jnp.bfloat16)
    b1p = jnp.pad(b1, ((0, 0), (0, H_p - H))).astype(jnp.float32)
    w2p = jnp.pad(w2, ((0, H_p - H), (0, D_out_p - D_out))).astype(jnp.bfloat16)
    b2p = jnp.pad(b2, ((0, 0), (0, D_out_p - D_out))).astype(jnp.float32)
    return (w1p, b1p, w2p, b2p), (D_in, H, D_out)


def _pick_batch_tile(D_in_p, H_p, D_out_p, x_itemsize, out_itemsize,
                     max_tb, budget_bytes):
    # Resident weights/biases; counted x2 (conservative: assume Pallas
    # double-buffers even constant-index blocks).
    weight_bytes = 2 * ((D_in_p * H_p + H_p * D_out_p) * 2
                        + (H_p + D_out_p) * 4)
    if weight_bytes > budget_bytes:
        # TODO(synk): add a weight-tiled path (stream w2 column blocks, or tile
        # H with an f32 accumulator + pl.when init/finalize) for layers whose
        # padded weights do not fit the VMEM budget (matters on v7x's 64 MiB).
        raise ValueError(
            "pipeline weights too large for the whole-weight-resident kernel "
            f"({weight_bytes} B > budget {budget_bytes} B)")
    per_row = ((D_in_p * x_itemsize + D_out_p * out_itemsize) * 2  # dbl-buffered io
               + D_in_p * 2            # bf16 cast of x inside the kernel
               + H_p * 4 + H_p * 2)    # f32 intermediate h + its bf16 cast
    tb = max(16, (max_tb // 16) * 16)
    while tb > 16 and weight_bytes + tb * per_row > budget_bytes:
        tb -= 16
    return tb


def torch_pipeline_forward(x, params, dims, *, max_tb=1024,
                           out_dtype=jnp.float32, tanh_in_bf16=False):
    """Fused sequential forward of the pipeline: Dense -> Tanh -> Dense.

    x      : (B, D_in) float32 (or bf16)
    params : (w1p, b1p, w2p, b2p) from prepare_pipeline_params
    dims   : (D_in, H, D_out) original (unpadded) feature dims
    returns (B, D_out) out_dtype
    """
    w1p, b1p, w2p, b2p = params
    D_in, H, D_out = dims
    B = x.shape[0]
    D_in_p, H_p = w1p.shape
    D_out_p = w2p.shape[1]

    # Per-generation VMEM sizing with headroom for Mosaic internal scratch.
    vmem_cap = _vmem_capacity_bytes()
    vmem_budget = max(32 * 1024 * 1024, vmem_cap - 24 * 1024 * 1024)
    vmem_limit = max(vmem_budget + 8 * 1024 * 1024, vmem_cap - 8 * 1024 * 1024)

    out_itemsize = jnp.dtype(out_dtype).itemsize
    x_itemsize = jnp.dtype(x.dtype).itemsize
    tb = _pick_batch_tile(D_in_p, H_p, D_out_p, x_itemsize, out_itemsize,
                          max_tb, vmem_budget)
    # v7x megacore: when the batch permits, keep >= 2 grid steps so the
    # "parallel" axis actually shards across both TensorCores.
    if B > 16:
        tb = min(tb, _round_up(-(-B // 2), 16))
    tb = max(16, min(tb, _round_up(B, 16)))
    B_p = _round_up(B, tb)

    # Only pad x when actually needed (keeps its dtype; bf16 cast is in-kernel).
    if B_p == B and D_in_p == D_in:
        xp = x
    else:
        xp = jnp.pad(x, ((0, B_p - B), (0, D_in_p - D_in)))

    vmem = pltpu.MemorySpace.VMEM
    grid = (B_p // tb,)

    cost = pl.CostEstimate(
        flops=2 * B_p * (D_in_p * H_p + H_p * D_out_p),
        transcendentals=B_p * H_p,
        bytes_accessed=(B_p * D_in_p * x_itemsize
                        + B_p * D_out_p * out_itemsize
                        + (D_in_p * H_p + H_p * D_out_p) * 2
                        + (H_p + D_out_p) * 4),
    )

    kernel = functools.partial(pipeline_kernel, tanh_in_bf16=tanh_in_bf16)

    out = pl.pallas_call(
        kernel,
        out_shape=jax.ShapeDtypeStruct((B_p, D_out_p), out_dtype),
        grid_spec=pl.GridSpec(
            grid=grid,
            in_specs=[
                # x: tiled along the batch axis (software-pipelined).
                pl.BlockSpec((tb, D_in_p), lambda i: (i, 0), memory_space=vmem),
                # Weights / biases: same block every step -> VMEM-resident.
                pl.BlockSpec((D_in_p, H_p), lambda i: (0, 0), memory_space=vmem),
                pl.BlockSpec((1, H_p), lambda i: (0, 0), memory_space=vmem),
                pl.BlockSpec((H_p, D_out_p), lambda i: (0, 0), memory_space=vmem),
                pl.BlockSpec((1, D_out_p), lambda i: (0, 0), memory_space=vmem),
            ],
            out_specs=pl.BlockSpec((tb, D_out_p), lambda i: (i, 0),
                                   memory_space=vmem),
        ),
        compiler_params=pltpu.CompilerParams(
            dimension_semantics=("parallel",),
            vmem_limit_bytes=int(vmem_limit),
        ),
        cost_estimate=cost,
    )(xp, w1p, b1p, w2p, b2p)

    return out[:B, :D_out]


def reference_forward(x, w1, b1, w2, b2):
    # Plain-JAX (f32) reference of the same pipeline, module by module.
    h = x @ w1 + b1        # Dense 1
    h = jnp.tanh(h)        # Tanh
    y = h @ w2 + b2        # Dense 2
    return y


if __name__ == "__main__":
    key = jax.random.PRNGKey(0)
    k_x, k_w1, k_b1, k_w2, k_b2 = jax.random.split(key, 5)

    B, D_in, H, D_out = 8, 32, 64, 16

    x = jax.random.normal(k_x, (B, D_in), dtype=jnp.float32)
    w1 = jax.random.normal(k_w1, (D_in, H), dtype=jnp.float32) * 0.1
    b1 = jax.random.normal(k_b1, (1, H), dtype=jnp.float32) * 0.1
    w2 = jax.random.normal(k_w2, (H, D_out), dtype=jnp.float32) * 0.1
    b2 = jax.random.normal(k_b2, (1, D_out), dtype=jnp.float32) * 0.1

    # One-time parameter prep (padding + bf16 cast hoisted out of forward).
    params, dims = prepare_pipeline_params(w1, b1, w2, b2)

    out = torch_pipeline_forward(x, params, dims)
    out = jax.block_until_ready(out)

    ref = reference_forward(x, w1, b1, w2, b2)
    assert out.shape == (B, D_out)
    # bf16 MXU inputs with f32 accumulation -> slightly looser tolerance.
    assert jnp.allclose(out, ref, atol=3e-2, rtol=3e-2), (
        f"mismatch vs reference, max abs err {jnp.max(jnp.abs(out - ref))}")

    print("KERNEL_OK")
</pallas_src>

<mosaic_0001>
module attributes {stable_mosaic.version = 11 : i64} {
  func.func @pipeline_kernel(%arg0: i32, %arg1: memref<16x128xf32, #tpu.memory_space<vmem>>, %arg2: memref<128x128xbf16, #tpu.memory_space<vmem>>, %arg3: memref<1x128xf32, #tpu.memory_space<vmem>>, %arg4: memref<128x128xbf16, #tpu.memory_space<vmem>>, %arg5: memref<1x128xf32, #tpu.memory_space<vmem>>, %arg6: memref<16x128xf32, #tpu.memory_space<vmem>>) attributes {dimension_semantics = [#tpu.dimension_semantics<parallel>], iteration_bounds = array<i64: 1>, scalar_prefetch = 0 : i64, scratch_operands = 0 : i64, tpu.core_type = #tpu.core_type<tc>, window_params = [{transform_indices = @transform_0, window_bounds = array<i64: 16, 128>}, {pipeline_mode = #tpu.pipeline_mode<synchronous>, transform_indices = @transform_1, window_bounds = array<i64: 128, 128>}, {pipeline_mode = #tpu.pipeline_mode<synchronous>, transform_indices = @transform_2, window_bounds = array<i64: 1, 128>}, {pipeline_mode = #tpu.pipeline_mode<synchronous>, transform_indices = @transform_3, window_bounds = array<i64: 128, 128>}, {pipeline_mode = #tpu.pipeline_mode<synchronous>, transform_indices = @transform_4, window_bounds = array<i64: 1, 128>}, {transform_indices = @transform_5, window_bounds = array<i64: 16, 128>}]} {
    %c0 = arith.constant 0 : index
    %c0_0 = arith.constant 0 : index
    %0 = vector.load %arg1[%c0, %c0_0] : memref<16x128xf32, #tpu.memory_space<vmem>>, vector<16x128xf32>
    %1 = arith.truncf %0 : vector<16x128xf32> to vector<16x128xbf16>
    %c0_1 = arith.constant 0 : index
    %c0_2 = arith.constant 0 : index
    %2 = vector.load %arg2[%c0_1, %c0_2] : memref<128x128xbf16, #tpu.memory_space<vmem>>, vector<128x128xbf16>
    %cst = arith.constant dense<0.000000e+00> : vector<16x128xf32>
    %3 = tpu.matmul %1, %2, %cst {dimension_numbers = #tpu.dot_dimension_numbers<[1], [0], [0], [1], [0, 0, 1, 1], [], []>} : vector<16x128xbf16>, vector<128x128xbf16>, vector<16x128xf32> -> vector<16x128xf32>
    %c0_3 = arith.constant 0 : index
    %c0_4 = arith.constant 0 : index
    %4 = vector.load %arg3[%c0_3, %c0_4] : memref<1x128xf32, #tpu.memory_space<vmem>>, vector<1x128xf32>
    %5 = vector.broadcast %4 : vector<1x128xf32> to vector<16x128xf32>
    %6 = arith.addf %3, %5 : vector<16x128xf32>
    %7 = math.tanh %6 : vector<16x128xf32>
    %8 = arith.truncf %7 : vector<16x128xf32> to vector<16x128xbf16>
    %c0_5 = arith.constant 0 : index
    %c0_6 = arith.constant 0 : index
    %9 = vector.load %arg4[%c0_5, %c0_6] : memref<128x128xbf16, #tpu.memory_space<vmem>>, vector<128x128xbf16>
    %cst_7 = arith.constant dense<0.000000e+00> : vector<16x128xf32>
    %10 = tpu.matmul %8, %9, %cst_7 {dimension_numbers = #tpu.dot_dimension_numbers<[1], [0], [0], [1], [0, 0, 1, 1], [], []>} : vector<16x128xbf16>, vector<128x128xbf16>, vector<16x128xf32> -> vector<16x128xf32>
    %c0_8 = arith.constant 0 : index
    %c0_9 = arith.constant 0 : index
    %11 = vector.load %arg5[%c0_8, %c0_9] : memref<1x128xf32, #tpu.memory_space<vmem>>, vector<1x128xf32>
    %12 = vector.broadcast %11 : vector<1x128xf32> to vector<16x128xf32>
    %13 = arith.addf %10, %12 : vector<16x128xf32>
    %c0_10 = arith.constant 0 : index
    %c0_11 = arith.constant 0 : index
    %14 = vector.load %arg6[%c0_10, %c0_11] : memref<16x128xf32, #tpu.memory_space<vmem>>, vector<16x128xf32>
    tpu.vector_store %arg6[%c0_10, %c0_11], %13 {strides = array<i32>} : memref<16x128xf32, #tpu.memory_space<vmem>>, vector<16x128xf32>,
    return
  }
  func.func @transform_0(%arg0: i32) -> (i32, i32) {
    %c0_i32 = arith.constant 0 : i32
    %c0_i32_0 = arith.constant 0 : i32
    return %arg0, %c0_i32 : i32, i32
  }
  func.func @transform_1(%arg0: i32) -> (i32, i32) {
    %c0_i32 = arith.constant 0 : i32
    %c0_i32_0 = arith.constant 0 : i32
    %c0_i32_1 = arith.constant 0 : i32
    return %c0_i32, %c0_i32_0 : i32, i32
  }
  func.func @transform_2(%arg0: i32) -> (i32, i32) {
    %c0_i32 = arith.constant 0 : i32
    %c0_i32_0 = arith.constant 0 : i32
    %c0_i32_1 = arith.constant 0 : i32
    return %c0_i32, %c0_i32_0 : i32, i32
  }
  func.func @transform_3(%arg0: i32) -> (i32, i32) {
    %c0_i32 = arith.constant 0 : i32
    %c0_i32_0 = arith.constant 0 : i32
    %c0_i32_1 = arith.constant 0 : i32
    return %c0_i32, %c0_i32_0 : i32, i32
  }
  func.func @transform_4(%arg0: i32) -> (i32, i32) {
    %c0_i32 = arith.constant 0 : i32
    %c0_i32_0 = arith.constant 0 : i32
    %c0_i32_1 = arith.constant 0 : i32
    return %c0_i32, %c0_i32_0 : i32, i32
  }
  func.func @transform_5(%arg0: i32) -> (i32, i32) {
    %c0_i32 = arith.constant 0 : i32
    %c0_i32_0 = arith.constant 0 : i32
    return %arg0, %c0_i32 : i32, i32
  }
}

</mosaic_0001>

<bundles_post_ra>
// kernel: tpu_custom_call.1
= control target key start
LH: loop header
LB: loop body
LE: loop exit
PB: predicated region body
PF: predicated region fallthrough
CT: control target
= control target key end

     0   :  { %10 = vsyncpa [#allocation3], 0  ;;  %s518_s0 = inlined_call_operand.hbm [shape: f32[16,128], index: 0, kind: input, shape index: {}]   ;;  %s519_s1 = inlined_call_operand.hbm [shape: bf16[128,128], index: 1, kind: input, shape index: {}]   ;;  %s520_s2 = inlined_call_operand.vmem [shape: f32[1,128], index: 2, kind: input, shape index: {}]   ;;  %s521_s3 = inlined_call_operand.hbm [shape: bf16[128,128], index: 3, kind: input, shape index: {}]   ;;  %s522_s4 = inlined_call_operand.vmem [shape: f32[1,128], index: 4, kind: input, shape index: {}]   ;;  %s523_s5 = inlined_call_operand.hbm [shape: f32[16,128], index: 5, kind: output, shape index: {}]  }
   0x1   :  { %11 = vsyncpa [#allocation6], 0  ;;  %s30_s20 = sshll.u32 %s519_s1, 4  ;;  %s31_s20 = int_to_ptr.hbm [resolvable:$true] %s30_s20 }
   0x2   :  { %12 = vsyncpa [#allocation4], 0  ;;  %s456_s21 = smov [#allocation5]   ;;  %s17_s25 = sshll.u32 %s518_s0, 4  ;;  %s18_s25 = int_to_ptr.hbm [resolvable:$true] %s17_s25 }
   0x3   :  { %s32_s22 = sshll.u32 %s456_s21, 4  ;;  %s457_s26 = smov 64   ;;  %s33_s22 = int_to_ptr.vmem [resolvable:$true] %s32_s22 }
   0x4   :  { %s458_s27 = smov 4   ;;  %s459_s28 = smov [#allocation2]  }
   0x5   :  { %38 = dma.hbm_to_vmem [thread:$0]  %s31_s20, 1024, %s33_s22, [#allocation6], %s457_s26, %s457_s26, %s458_s27  }
   0x6   :  { %s19_s29 = sshll.u32 %s459_s28, 4  ;;  %s460_s30 = smov 128   ;;  %s20_s29 = int_to_ptr.vmem [resolvable:$true] %s19_s29 }
   0x7   :  { %s461_s6 = smov 8   ;;  %s45_s8 = sshll.u32 %s521_s3, 4  ;;  %s46_s8 = int_to_ptr.hbm [resolvable:$true] %s45_s8 }
   0x8   :  { %25 = dma.hbm_to_vmem [thread:$0]  %s18_s25, 256, %s20_s29, [#allocation3], %s460_s30, %s460_s30, %s461_s6  }
   0x9   :  { %s462_s9 = smov [#allocation7]  }
   0xa   :  { %s47_s0 = sshll.u32 %s462_s9, 4  ;;  %s48_s0 = int_to_ptr.vmem [resolvable:$true] %s47_s0 }
   0xb   :  { %53 = dma.hbm_to_vmem [thread:$0]  %s46_s8, 1024, %s48_s0, [#allocation6], %s457_s26, %s457_s26, %s458_s27  }
   0xc   :  { %450 = dma.done.wait [#allocation3], 256  }
   0xd   :  { %451 = vsyncadd [#allocation3], 4294967040 }
   0xe   :  { %452 = dma.done.wait [#allocation6], 2048  }
   0xf   :  { %453 = vsyncadd [#allocation6], 4294965248  ;;  %v331_v0 = vld [vmem:[#allocation5 + $0x38] sm:$0xff]  ;;  %v330_v1 = vld [vmem:[#allocation5 + $0x30] sm:$0xff]  ;;  %s463_s13 = smov [#allocation8]   ;;  %s246_s16 = sshll.u32 %s523_s5, 4  ;;  %s247_s16 = int_to_ptr.hbm [resolvable:$true] %s246_s16 }
  0x10   :  { %139 = vmatpush.bf16.msra.mxu0 %v331_v0  ;;  %v339_v2 = vld [vmem:[#allocation7 + $0x38] sm:$0xff]  ;;  %v338_v3 = vld [vmem:[#allocation7 + $0x30] sm:$0xff]  ;;  %v329_v4 = vld [vmem:[#allocation5 + $0x28] sm:$0xff]  ;;  %s244_s14 = sshll.u32 %s463_s13, 4  ;;  %s245_s14 = int_to_ptr.vmem [resolvable:$true] %s244_s14 }
  0x11   :  { %224 = vmatpush.bf16.msra.mxu1 %v339_v2  ;;  %v337_v5 = vld [vmem:[#allocation7 + $0x28] sm:$0xff]  ;;  %v328_v6 = vld [vmem:[#allocation5 + $0x20] sm:$0xff]  ;;  %v327_v7 = vld [vmem:[#allocation5 + $0x18] sm:$0xff] }
  0x12   :  { %v326_v8 = vld [vmem:[#allocation5 + $0x10] sm:$0xff]  ;;  %v325_v9 = vld [vmem:[#allocation5 + $0x8] sm:$0xff]  ;;  %v324_v10 = vld [vmem:[#allocation5] sm:$0xff] }
  0x13   :  { %v68_v11 = vld [vmem:[#allocation2] sm:$0xff]  ;;  %v69_v12 = vld [vmem:[#allocation2 + $0x8] sm:$0xff]  ;;  %v336_v14 = vld [vmem:[#allocation7 + $0x20] sm:$0xff] }
  0x14   :  { %140 = vmatpush.bf16.msra.mxu0 %v330_v1  ;;  %v70_v13 = vpack.c.bf16 %v69_v12, %v68_v11  ;;  %v335_v15 = vld [vmem:[#allocation7 + $0x18] sm:$0xff]  ;;  %v334_v16 = vld [vmem:[#allocation7 + $0x10] sm:$0xff]  ;;  %v333_v17 = vld [vmem:[#allocation7 + $0x8] sm:$0xff] }
  0x15   :  { %225 = vmatpush.bf16.msra.mxu1 %v338_v3  ;;  %v332_v18 = vld [vmem:[#allocation7] sm:$0xff]  ;;  %v348_v20 = vld [vmem:[%s520_s2] ss:$0 sm:$0xff] }
  0x16   :  { %v349_v27 = vld [vmem:[%s522_s4] ss:$0 sm:$0xff] }
  0x18   :  { %141 = vmatpush.bf16.msra.mxu0 %v329_v4 }
  0x19   :  { %226 = vmatpush.bf16.msra.mxu1 %v337_v5 }
  0x1c   :  { %142 = vmatpush.bf16.msra.mxu0 %v328_v6 }
  0x1d   :  { %227 = vmatpush.bf16.msra.mxu1 %v336_v14 }
  0x20   :  { %143 = vmatpush.bf16.msra.mxu0 %v327_v7 }
  0x21   :  { %228 = vmatpush.bf16.msra.mxu1 %v335_v15 }
  0x24   :  { %144 = vmatpush.bf16.msra.mxu0 %v326_v8 }
  0x25   :  { %229 = vmatpush.bf16.msra.mxu1 %v334_v16 }
  0x28   :  { %145 = vmatpush.bf16.msra.mxu0 %v325_v9 }
  0x29   :  { %230 = vmatpush.bf16.msra.mxu1 %v333_v17 }
  0x2c   :  { %146 = vmatpush.bf16.msra.mxu0 %v324_v10 }
  0x2d   :  { %231 = vmatpush.bf16.msra.mxu1 %v332_v18 }
  0x2f   :  { %147 = vmatmul.bf16.vlgmr.msra.gmra.mxu0 %v70_v13 }
  0xac   :  { %v148_v19 = vpop.f32.mrf.mxu0 }
  0xad   :  { %v149_v21 = vadd.f32 %v348_v20, %v148_v19 }
  0xaf   :  { %350 = vtanh.f32 %v149_v21 }
  0xb4   :  { %v150_v22 = vpop.f32.mrf.mxu0 }
  0xb5   :  { %v151_v23 = vadd.f32 %v348_v20, %v150_v22  ;;  %v351_v24 = vpop.eup %350 }
  0xb7   :  { %352 = vtanh.f32 %v151_v23 }
  0xbd   :  { %v353_v25 = vpop.eup %352 }
  0xbe   :  { %v155_v26 = vpack.c.bf16 %v353_v25, %v351_v24 }
  0xc0   :  { %232 = vmatmul.bf16.vlgmr.msra.gmra.mxu1 %v155_v26 }
 0x13d   :  { %v233_v28 = vpop.f32.mrf.mxu1 }
 0x13e   :  { %v234_v29 = vadd.f32 %v349_v27, %v233_v28 }
 0x140   :  { %238 = vst [vmem:[#allocation8] sm:$0xff] %v234_v29 }
 0x145   :  { %v235_v30 = vpop.f32.mrf.mxu1 }
 0x146   :  { %v236_v31 = vadd.f32 %v349_v27, %v235_v30 }
 0x148   :  { %239 = vst [vmem:[#allocation8 + $0x8] sm:$0xff] %v236_v31 }
 0x149   :  { %252 = dma.vmem_to_hbm [thread:$0]  %s245_s14, 256, %s247_s16, [#allocation4], %s460_s30, %s460_s30, %s461_s6  }
 0x14a   :  { %454 = dma.done.wait [#allocation4], 256  }
 0x14b   :  { %455 = vsyncadd [#allocation4], 4294967040 }
 0x14c   :  { %257 = vsyncpa [#allocation3], 1 }
 0x14d   :  { %258 = vsyncpa [#allocation6], 1 }
 0x14e   :  { %259 = vsyncpa [#allocation4], 1 }

</bundles_post_ra>
